<compile_context>
chip_gen: v6e
topology: v6e:2x2x1
jax: 0.10.0
libtpu: 0.0.40
codegen_flags: <defaults>
</compile_context>

<pallas_src>
import functools

import jax
import jax.numpy as jnp
from jax.experimental import pallas as pl
from jax.experimental.pallas import tpu as pltpu

# config constants from macbf (config.DIST_MIN_THRES / config.OBS_RADIUS)
DIST_MIN_THRES = 0.12
OBS_RADIUS = 1.0
STATE_DIFF_DIM = 10
FEAT_DIM = STATE_DIFF_DIM + 1 + 1  # 12 = state diff + identity + signed dist


def _round_up(a, b):
    return ((a + b - 1) // b) * b


def _cbf_kernel(x_ref, w1_ref, b1_ref, w2_ref, b2_ref, w3_ref, b3_ref,
                w4_ref, b4_ref, out_ref, *, r, obs_radius, matmul_dtype):
    """One tile of pairs (lane axis). Finishes the features, runs the MLP."""
    # x_ref: (12, tile) f32 — rows 0-9 state diff, row 10 identity, row 11 zeros.
    x0 = x_ref[0:1, :]
    x1 = x_ref[1:2, :]
    x2 = x_ref[2:3, :]

    # shared subexpression for dist_2d and d_norm (same ordering as reference)
    sq01 = (x0 * x0 + 1e-4) + (x1 * x1 + 1e-4)                    # (1, tile)
    dist_2d = jnp.sqrt(sq01)
    mask = (dist_2d <= obs_radius).astype(jnp.float32)            # (1, tile)
    signed_dist = jnp.sqrt(sq01 + (x2 * x2 + 1e-4)) - r           # (1, tile)

    # Fold signed dist into row 11 of the resident input block so layer 1 is a
    # single K=12 MXU contraction (writes to input blocks are not copied back).
    x_ref[FEAT_DIM - 1:FEAT_DIM, :] = signed_dist
    feat = x_ref[...].astype(matmul_dtype)                        # (12, tile)

    # --- layer 1 (12 -> 64): bf16 operands, f32 accumulation ----------------
    h = jnp.dot(w1_ref[...], feat, preferred_element_type=jnp.float32)
    h = jnp.maximum(h + b1_ref[...], 0.0).astype(matmul_dtype)    # (64, tile)

    # --- layers 2, 3 (64 -> 128 -> 64): bf16 operands, f32 accumulation -----
    h = jnp.dot(w2_ref[...], h, preferred_element_type=jnp.float32) + b2_ref[...]
    h = jnp.maximum(h, 0.0).astype(matmul_dtype)
    h = jnp.dot(w3_ref[...], h, preferred_element_type=jnp.float32) + b3_ref[...]
    h = jnp.maximum(h, 0.0)                                       # (64, tile) f32

    # --- layer 4 (64 -> 1): VPU broadcast-mul + sublane reduce (skip MXU) ---
    h_raw = jnp.sum(h * w4_ref[...], axis=0, keepdims=True) + b4_ref[0, 0]

    # packed lane-dense output, one slab store: row 0 = masked h, row 1 = mask
    out_ref[...] = jnp.concatenate([h_raw * mask, mask], axis=0)


def init_params(key):
    """Synthetic weights in the PyTorch Conv1d layout: w (out, in), b (out,)."""
    ks = jax.random.split(key, 8)
    dims = [(FEAT_DIM, 64), (64, 128), (128, 64), (64, 1)]
    params = []
    for i, (din, dout) in enumerate(dims):
        w = jax.random.normal(ks[2 * i], (dout, din), jnp.float32) * (1.0 / jnp.sqrt(din))
        b = jax.random.normal(ks[2 * i + 1], (dout,), jnp.float32) * 0.01
        params += [w, b]
    return tuple(params)


def network_cbf_forward(x, params, r=DIST_MIN_THRES, obs_radius=OBS_RADIUS,
                        tile=4096, matmul_dtype=jnp.bfloat16,
                        vmem_limit_bytes=None):
    """Pallas implementation of NetworkCBF.forward.

    Args:
      x: (N, N, 10) float32 state differences.
    Returns:
      h: (N, N, 1), mask: (N, N, 1)
    """
    N = x.shape[0]
    M = N * N
    # Keep >= 2 grid steps whenever M >= 256 so dimension_semantics=("parallel",)
    # can shard across v7x's 2 TensorCores; clamp to the padded pair count.
    tile_cap = _round_up(max(128, -(-M // 2)), 128)
    tile = _round_up(max(128, min(tile, tile_cap)), 128)
    Mp = _round_up(M, tile)

    # Channel-major (12, Mp) input: rows 0-9 state diff, row 10 = eye(N)
    # flattened, row 11 = placeholder (signed dist is written in-kernel).
    # Single fused XLA transpose+concat+pad; no standalone (N^2, 12) pass.
    # TODO(synk): for very large N, produce x channel-major upstream to skip
    # this relayout entirely.
    xcm = jnp.transpose(x.reshape(M, STATE_DIFF_DIM).astype(jnp.float32))
    id_row = jnp.eye(N, dtype=jnp.float32).reshape(1, M)
    x2d = jnp.concatenate([xcm, id_row, jnp.zeros((1, M), jnp.float32)], axis=0)
    x2d = jnp.pad(x2d, ((0, 0), (0, Mp - M)))

    w1, b1, w2, b2, w3, b3, w4, b4 = params
    w1 = w1.astype(matmul_dtype)                   # (64, 12)
    w2 = w2.astype(matmul_dtype)                   # (128, 64)
    w3 = w3.astype(matmul_dtype)                   # (64, 128)
    w4c = w4.reshape(64, 1).astype(jnp.float32)    # final layer on VPU/XLU
    b1c = b1.reshape(-1, 1).astype(jnp.float32)
    b2c = b2.reshape(-1, 1).astype(jnp.float32)
    b3c = b3.reshape(-1, 1).astype(jnp.float32)
    b4c = b4.reshape(1, 1).astype(jnp.float32)     # scalar bias lives in SMEM

    kernel = functools.partial(_cbf_kernel, r=float(r),
                               obs_radius=float(obs_radius),
                               matmul_dtype=matmul_dtype)
    const = lambda i: (0, 0)

    out = pl.pallas_call(
        kernel,
        out_shape=jax.ShapeDtypeStruct((2, Mp), jnp.float32),
        grid=(Mp // tile,),
        in_specs=[
            pl.BlockSpec((FEAT_DIM, tile), lambda i: (0, i)),
            pl.BlockSpec((64, FEAT_DIM), const),
            pl.BlockSpec((64, 1), const),
            pl.BlockSpec((128, 64), const),
            pl.BlockSpec((128, 1), const),
            pl.BlockSpec((64, 128), const),
            pl.BlockSpec((64, 1), const),
            pl.BlockSpec((64, 1), const),
            pl.BlockSpec(memory_space=pltpu.MemorySpace.SMEM),
        ],
        out_specs=pl.BlockSpec((2, tile), lambda i: (0, i)),
        compiler_params=pltpu.CompilerParams(
            dimension_semantics=("parallel",),
            vmem_limit_bytes=vmem_limit_bytes),
    )(x2d, w1, b1c, w2, b2c, w3, b3c, w4c, b4c)

    # Padded lanes M..Mp compute garbage with mask=1; this slice discards them.
    h = out[0, :M].reshape(N, N, 1)
    mask = out[1, :M].reshape(N, N, 1)
    return h, mask


def reference_forward(x, params, r=DIST_MIN_THRES, obs_radius=OBS_RADIUS,
                      matmul_dtype=jnp.float32):
    """Pure-JAX mirror of the PyTorch forward.

    `matmul_dtype` applies the same bf16 cast points as the kernel (layers
    1-3 bf16 operands, f32 accumulation) for a tight check; pass jnp.float32
    for the exact f32 torch-equivalent path.
    """
    w1, b1, w2, b2, w3, b3, w4, b4 = params
    N = x.shape[0]
    hi = jax.lax.Precision.HIGHEST
    d_norm = jnp.sqrt(jnp.sum(jnp.square(x[:, :, :3]) + 1e-4, axis=2, keepdims=True))
    eye = jnp.eye(N, dtype=x.dtype)[:, :, None]
    feats = jnp.concatenate([x, eye, d_norm - r], axis=2)
    dist_2d = jnp.sqrt(jnp.sum(jnp.square(feats[:, :, :2]) + 1e-4, axis=2, keepdims=True))
    mask = (dist_2d <= obs_radius).astype(jnp.float32)
    cast = lambda a: a.astype(matmul_dtype)
    h = jax.nn.relu(jnp.dot(cast(feats), cast(w1.T),
                            preferred_element_type=jnp.float32) + b1)
    h = jax.nn.relu(jnp.dot(cast(h), cast(w2.T),
                            preferred_element_type=jnp.float32) + b2)
    h = jax.nn.relu(jnp.dot(cast(h), cast(w3.T),
                            preferred_element_type=jnp.float32) + b3)
    h_raw = jnp.dot(h, w4.T, precision=hi) + b4
    return h_raw * mask, mask


if __name__ == "__main__":
    N_AGENTS = 8  # small example: x is (N, N, 10)
    key = jax.random.PRNGKey(0)
    x = jax.random.normal(key, (N_AGENTS, N_AGENTS, STATE_DIFF_DIM), jnp.float32)
    params = init_params(jax.random.PRNGKey(0))

    h, mask = network_cbf_forward(x, params)
    jax.block_until_ready((h, mask))

    # Reference with the same bf16 cast points (f32 accumulation) for a tight
    # comparison; the pure-f32 reference also matches to bf16 precision.
    h_ref, mask_ref = reference_forward(x, params, matmul_dtype=jnp.bfloat16)
    assert h.shape == (N_AGENTS, N_AGENTS, 1) and mask.shape == (N_AGENTS, N_AGENTS, 1)
    assert jnp.array_equal(mask, mask_ref)
    assert jnp.allclose(h, h_ref, atol=2e-2, rtol=2e-2)
    print("KERNEL_OK")
</pallas_src>

<mosaic_0001>
module attributes {stable_mosaic.version = 11 : i64} {
  func.func @_cbf_kernel(%arg0: i32, %arg1: memref<12x128xf32, #tpu.memory_space<vmem>>, %arg2: memref<64x12xbf16, #tpu.memory_space<vmem>>, %arg3: memref<64x1xf32, #tpu.memory_space<vmem>>, %arg4: memref<128x64xbf16, #tpu.memory_space<vmem>>, %arg5: memref<128x1xf32, #tpu.memory_space<vmem>>, %arg6: memref<64x128xbf16, #tpu.memory_space<vmem>>, %arg7: memref<64x1xf32, #tpu.memory_space<vmem>>, %arg8: memref<64x1xf32, #tpu.memory_space<vmem>>, %arg9: memref<1x1xf32, #tpu.memory_space<smem>>, %arg10: memref<2x128xf32, #tpu.memory_space<vmem>>) attributes {dimension_semantics = [#tpu.dimension_semantics<parallel>], iteration_bounds = array<i64: 1>, scalar_prefetch = 0 : i64, scratch_operands = 0 : i64, tpu.core_type = #tpu.core_type<tc>, window_params = [{transform_indices = @transform_0, window_bounds = array<i64: 12, 128>}, {pipeline_mode = #tpu.pipeline_mode<synchronous>, transform_indices = @transform_1, window_bounds = array<i64: 64, 12>}, {pipeline_mode = #tpu.pipeline_mode<synchronous>, transform_indices = @transform_2, window_bounds = array<i64: 64, 1>}, {pipeline_mode = #tpu.pipeline_mode<synchronous>, transform_indices = @transform_3, window_bounds = array<i64: 128, 64>}, {pipeline_mode = #tpu.pipeline_mode<synchronous>, transform_indices = @transform_4, window_bounds = array<i64: 128, 1>}, {pipeline_mode = #tpu.pipeline_mode<synchronous>, transform_indices = @transform_5, window_bounds = array<i64: 64, 128>}, {pipeline_mode = #tpu.pipeline_mode<synchronous>, transform_indices = @transform_6, window_bounds = array<i64: 64, 1>}, {pipeline_mode = #tpu.pipeline_mode<synchronous>, transform_indices = @transform_7, window_bounds = array<i64: 64, 1>}, {transform_indices = @transform_8, window_bounds = array<i64: 1, 1>}, {transform_indices = @transform_9, window_bounds = array<i64: 2, 128>}]} {
    %c0 = arith.constant 0 : index
    %c0_0 = arith.constant 0 : index
    %0 = vector.load %arg1[%c0, %c0_0] : memref<12x128xf32, #tpu.memory_space<vmem>>, vector<1x128xf32>
    %c1 = arith.constant 1 : index
    %c0_1 = arith.constant 0 : index
    %1 = vector.load %arg1[%c1, %c0_1] : memref<12x128xf32, #tpu.memory_space<vmem>>, vector<1x128xf32>
    %c2 = arith.constant 2 : index
    %c0_2 = arith.constant 0 : index
    %2 = vector.load %arg1[%c2, %c0_2] : memref<12x128xf32, #tpu.memory_space<vmem>>, vector<1x128xf32>
    %3 = arith.mulf %0, %0 : vector<1x128xf32>
    %cst = arith.constant 9.99999974E-5 : f32
    %4 = vector.broadcast %cst : f32 to vector<1x128xf32>
    %5 = arith.addf %3, %4 : vector<1x128xf32>
    %6 = arith.mulf %1, %1 : vector<1x128xf32>
    %cst_3 = arith.constant 9.99999974E-5 : f32
    %7 = vector.broadcast %cst_3 : f32 to vector<1x128xf32>
    %8 = arith.addf %6, %7 : vector<1x128xf32>
    %9 = arith.addf %5, %8 : vector<1x128xf32>
    %10 = math.sqrt %9 : vector<1x128xf32>
    %cst_4 = arith.constant 1.000000e+00 : f32
    %11 = vector.broadcast %cst_4 : f32 to vector<1x128xf32>
    %12 = arith.cmpf ole, %10, %11 : vector<1x128xf32>
    %13 = arith.extui %12 : vector<1x128xi1> to vector<1x128xi32>
    %14 = arith.sitofp %13 : vector<1x128xi32> to vector<1x128xf32>
    %15 = arith.mulf %2, %2 : vector<1x128xf32>
    %cst_5 = arith.constant 9.99999974E-5 : f32
    %16 = vector.broadcast %cst_5 : f32 to vector<1x128xf32>
    %17 = arith.addf %15, %16 : vector<1x128xf32>
    %18 = arith.addf %9, %17 : vector<1x128xf32>
    %19 = math.sqrt %18 : vector<1x128xf32>
    %cst_6 = arith.constant 1.200000e-01 : f32
    %20 = vector.broadcast %cst_6 : f32 to vector<1x128xf32>
    %21 = arith.subf %19, %20 : vector<1x128xf32>
    %c11 = arith.constant 11 : index
    %c0_7 = arith.constant 0 : index
    %22 = vector.load %arg1[%c11, %c0_7] : memref<12x128xf32, #tpu.memory_space<vmem>>, vector<1x128xf32>
    tpu.vector_store %arg1[%c11, %c0_7], %21 {strides = array<i32>} : memref<12x128xf32, #tpu.memory_space<vmem>>, vector<1x128xf32>,
    %c0_8 = arith.constant 0 : index
    %c0_9 = arith.constant 0 : index
    %23 = vector.load %arg1[%c0_8, %c0_9] : memref<12x128xf32, #tpu.memory_space<vmem>>, vector<12x128xf32>
    %24 = arith.truncf %23 : vector<12x128xf32> to vector<12x128xbf16>
    %c0_10 = arith.constant 0 : index
    %c0_11 = arith.constant 0 : index
    %25 = vector.load %arg2[%c0_10, %c0_11] : memref<64x12xbf16, #tpu.memory_space<vmem>>, vector<64x12xbf16>
    %cst_12 = arith.constant dense<0.000000e+00> : vector<64x128xf32>
    %26 = tpu.matmul %25, %24, %cst_12 {dimension_numbers = #tpu.dot_dimension_numbers<[1], [0], [0], [1], [0, 0, 1, 1], [], []>} : vector<64x12xbf16>, vector<12x128xbf16>, vector<64x128xf32> -> vector<64x128xf32>
    %c0_13 = arith.constant 0 : index
    %c0_14 = arith.constant 0 : index
    %27 = vector.load %arg3[%c0_13, %c0_14] : memref<64x1xf32, #tpu.memory_space<vmem>>, vector<64x1xf32>
    %28 = vector.broadcast %27 : vector<64x1xf32> to vector<64x128xf32>
    %29 = arith.addf %26, %28 : vector<64x128xf32>
    %cst_15 = arith.constant 0.000000e+00 : f32
    %30 = vector.broadcast %cst_15 : f32 to vector<64x128xf32>
    %31 = arith.maximumf %29, %30 : vector<64x128xf32>
    %32 = arith.truncf %31 : vector<64x128xf32> to vector<64x128xbf16>
    %c0_16 = arith.constant 0 : index
    %c0_17 = arith.constant 0 : index
    %33 = vector.load %arg4[%c0_16, %c0_17] : memref<128x64xbf16, #tpu.memory_space<vmem>>, vector<128x64xbf16>
    %cst_18 = arith.constant dense<0.000000e+00> : vector<128x128xf32>
    %34 = tpu.matmul %33, %32, %cst_18 {dimension_numbers = #tpu.dot_dimension_numbers<[1], [0], [0], [1], [0, 0, 1, 1], [], []>} : vector<128x64xbf16>, vector<64x128xbf16>, vector<128x128xf32> -> vector<128x128xf32>
    %c0_19 = arith.constant 0 : index
    %c0_20 = arith.constant 0 : index
    %35 = vector.load %arg5[%c0_19, %c0_20] : memref<128x1xf32, #tpu.memory_space<vmem>>, vector<128x1xf32>
    %36 = vector.broadcast %35 : vector<128x1xf32> to vector<128x128xf32>
    %37 = arith.addf %34, %36 : vector<128x128xf32>
    %cst_21 = arith.constant 0.000000e+00 : f32
    %38 = vector.broadcast %cst_21 : f32 to vector<128x128xf32>
    %39 = arith.maximumf %37, %38 : vector<128x128xf32>
    %40 = arith.truncf %39 : vector<128x128xf32> to vector<128x128xbf16>
    %c0_22 = arith.constant 0 : index
    %c0_23 = arith.constant 0 : index
    %41 = vector.load %arg6[%c0_22, %c0_23] : memref<64x128xbf16, #tpu.memory_space<vmem>>, vector<64x128xbf16>
    %cst_24 = arith.constant dense<0.000000e+00> : vector<64x128xf32>
    %42 = tpu.matmul %41, %40, %cst_24 {dimension_numbers = #tpu.dot_dimension_numbers<[1], [0], [0], [1], [0, 0, 1, 1], [], []>} : vector<64x128xbf16>, vector<128x128xbf16>, vector<64x128xf32> -> vector<64x128xf32>
    %c0_25 = arith.constant 0 : index
    %c0_26 = arith.constant 0 : index
    %43 = vector.load %arg7[%c0_25, %c0_26] : memref<64x1xf32, #tpu.memory_space<vmem>>, vector<64x1xf32>
    %44 = vector.broadcast %43 : vector<64x1xf32> to vector<64x128xf32>
    %45 = arith.addf %42, %44 : vector<64x128xf32>
    %cst_27 = arith.constant 0.000000e+00 : f32
    %46 = vector.broadcast %cst_27 : f32 to vector<64x128xf32>
    %47 = arith.maximumf %45, %46 : vector<64x128xf32>
    %c0_28 = arith.constant 0 : index
    %c0_29 = arith.constant 0 : index
    %48 = vector.load %arg8[%c0_28, %c0_29] : memref<64x1xf32, #tpu.memory_space<vmem>>, vector<64x1xf32>
    %49 = vector.broadcast %48 : vector<64x1xf32> to vector<64x128xf32>
    %50 = arith.mulf %47, %49 : vector<64x128xf32>
    %cst_30 = arith.constant dense<0.000000e+00> : vector<128xf32>
    %51 = vector.multi_reduction <add>, %50, %cst_30 [0] : vector<64x128xf32> to vector<128xf32>
    %52 = vector.shape_cast %51 : vector<128xf32> to vector<1x128xf32>
    %c0_31 = arith.constant 0 : index
    %c0_32 = arith.constant 0 : index
    %53 = memref.load %arg9[%c0_31, %c0_32] : memref<1x1xf32, #tpu.memory_space<smem>>
    %54 = vector.broadcast %53 : f32 to vector<1x128xf32>
    %55 = arith.addf %52, %54 : vector<1x128xf32>
    %56 = arith.mulf %55, %14 : vector<1x128xf32>
    %57 = tpu.concatenate %56, %14 in 0 : vector<1x128xf32>, vector<1x128xf32> -> vector<2x128xf32>
    %c0_33 = arith.constant 0 : index
    %c0_34 = arith.constant 0 : index
    %58 = vector.load %arg10[%c0_33, %c0_34] : memref<2x128xf32, #tpu.memory_space<vmem>>, vector<2x128xf32>
    tpu.vector_store %arg10[%c0_33, %c0_34], %57 {strides = array<i32>} : memref<2x128xf32, #tpu.memory_space<vmem>>, vector<2x128xf32>,
    return
  }
  func.func @transform_0(%arg0: i32) -> (i32, i32) {
    %c0_i32 = arith.constant 0 : i32
    %c0_i32_0 = arith.constant 0 : i32
    return %c0_i32, %arg0 : i32, i32
  }
  func.func @transform_1(%arg0: i32) -> (i32, i32) {
    %c0_i32 = arith.constant 0 : i32
    %c0_i32_0 = arith.constant 0 : i32
    %c0_i32_1 = arith.constant 0 : i32
    return %c0_i32, %c0_i32_0 : i32, i32
  }
  func.func @transform_2(%arg0: i32) -> (i32, i32) {
    %c0_i32 = arith.constant 0 : i32
    %c0_i32_0 = arith.constant 0 : i32
    %c0_i32_1 = arith.constant 0 : i32
    return %c0_i32, %c0_i32_0 : i32, i32
  }
  func.func @transform_3(%arg0: i32) -> (i32, i32) {
    %c0_i32 = arith.constant 0 : i32
    %c0_i32_0 = arith.constant 0 : i32
    %c0_i32_1 = arith.constant 0 : i32
    return %c0_i32, %c0_i32_0 : i32, i32
  }
  func.func @transform_4(%arg0: i32) -> (i32, i32) {
    %c0_i32 = arith.constant 0 : i32
    %c0_i32_0 = arith.constant 0 : i32
    %c0_i32_1 = arith.constant 0 : i32
    return %c0_i32, %c0_i32_0 : i32, i32
  }
  func.func @transform_5(%arg0: i32) -> (i32, i32) {
    %c0_i32 = arith.constant 0 : i32
    %c0_i32_0 = arith.constant 0 : i32
    %c0_i32_1 = arith.constant 0 : i32
    return %c0_i32, %c0_i32_0 : i32, i32
  }
  func.func @transform_6(%arg0: i32) -> (i32, i32) {
    %c0_i32 = arith.constant 0 : i32
    %c0_i32_0 = arith.constant 0 : i32
    %c0_i32_1 = arith.constant 0 : i32
    return %c0_i32, %c0_i32_0 : i32, i32
  }
  func.func @transform_7(%arg0: i32) -> (i32, i32) {
    %c0_i32 = arith.constant 0 : i32
    %c0_i32_0 = arith.constant 0 : i32
    %c0_i32_1 = arith.constant 0 : i32
    return %c0_i32, %c0_i32_0 : i32, i32
  }
  func.func @transform_8(%arg0: i32) -> (i32, i32) {
    %c0_i32 = arith.constant 0 : i32
    %c0_i32_0 = arith.constant 0 : i32
    %c0_i32_1 = arith.constant 0 : i32
    return %c0_i32, %c0_i32_0 : i32, i32
  }
  func.func @transform_9(%arg0: i32) -> (i32, i32) {
    %c0_i32 = arith.constant 0 : i32
    %c0_i32_0 = arith.constant 0 : i32
    return %c0_i32, %arg0 : i32, i32
  }
}

</mosaic_0001>

<bundles_post_ra>
// kernel: tpu_custom_call.1
= control target key start
LH: loop header
LB: loop body
LE: loop exit
PB: predicated region body
PF: predicated region fallthrough
CT: control target
= control target key end

     0   :  { %vm144_vm0 = vcmask 97280   ;;  %v947_v10 = vmov 0   ;;  %s1222_s0 = inlined_call_operand.vmem [shape: f32[12,128], index: 0, kind: input, shape index: {}]   ;;  %s1223_s1 = inlined_call_operand.vmem [shape: bf16[64,12], index: 1, kind: input, shape index: {}]   ;;  %s1224_s2 = inlined_call_operand.vmem [shape: f32[64,1], index: 2, kind: input, shape index: {}]   ;;  %s1225_s3 = inlined_call_operand.vmem [shape: bf16[128,64], index: 3, kind: input, shape index: {}]   ;;  %s1226_s4 = inlined_call_operand.vmem [shape: f32[128,1], index: 4, kind: input, shape index: {}]   ;;  %s1227_s5 = inlined_call_operand.vmem [shape: bf16[64,128], index: 5, kind: input, shape index: {}]   ;;  %s1228_s6 = inlined_call_operand.vmem [shape: f32[64,1], index: 6, kind: input, shape index: {}]   ;;  %s1229_s7 = inlined_call_operand.vmem [shape: f32[64,1], index: 7, kind: input, shape index: {}]   ;;  %s1230_s8 = inlined_call_operand.<no memory space> [shape: f32[1,1], index: 8, kind: input, shape index: {}]   ;;  %s1231_s9 = inlined_call_operand.hbm [shape: f32[2,128], index: 9, kind: output, shape index: {}]  }
   0x1   :  { %v35_v0 = vld [vmem:[%s1222_s0] sm:$0x1]  ;;  %v36_v1 = vld [vmem:[%s1222_s0 + $0x1] sm:$0x1]  ;;  %v37_v2 = vld [vmem:[%s1222_s0 + $0x2] sm:$0x1]  ;;  %903 = vset.pattern.permute.xlu0 %v947_v10  ;;  %904 = vset.pattern.permute.xlu1 %v947_v10 }
   0x2   :  { %v38_v3 = vmul.f32 %v35_v0, %v35_v0  ;;  %v40_v4 = vmul.f32 %v36_v1, %v36_v1  ;;  %v53_v5 = vmul.f32 %v37_v2, %v37_v2  ;;  %v905_v6 = vld [vmem:[%s1223_s1] sm:$0xff]   ;;  %v82_v11 = vld [vmem:[%s1224_s2 + $0x30] sm:$0xff]  ;;  %v83_v14 = vld [vmem:[%s1224_s2 + $0x38] sm:$0xff] }
   0x3   :  { %843 = vmatprep.mubr.msk.bf16.mxu0 %vm144_vm0, %v905_v6  ;;  %116 = vperm.xlu0 %903, %v82_v11   ;;  %v80_v13 = vld [vmem:[%s1224_s2 + $0x20] sm:$0xff]  ;;  %v81_v16 = vld [vmem:[%s1224_s2 + $0x28] sm:$0xff]  ;;  %v78_v17 = vld [vmem:[%s1224_s2 + $0x10] sm:$0xff] }
   0x4   :  { %v39_v7 = vadd.f32 0.0001, %v38_v3  ;;  %v41_v8 = vadd.f32 0.0001, %v40_v4  ;;  %v54_v9 = vadd.f32 0.0001, %v53_v5  ;;  %106 = vperm.xlu1 %904, %v80_v13  }
   0x5   :  { %v79_v18 = vld [vmem:[%s1224_s2 + $0x18] sm:$0xff]  ;;  %v76_v19 = vld [vmem:[%s1224_s2] sm:$0xff]  ;;  %v77_v20 = vld [vmem:[%s1224_s2 + $0x8] sm:$0xff] }
   0x6   :  { %v1016_v12 = vadd.f32 %v41_v8, %v39_v7  ;;  %v268_v21 = vld [vmem:[%s1226_s4 + $0x70] sm:$0xff]  ;;  %v269_v23 = vld [vmem:[%s1226_s4 + $0x78] sm:$0xff]  ;;  %v266_v24 = vld [vmem:[%s1226_s4 + $0x60] sm:$0xff] }
   0x7   :  { %121 = vperm.xlu0 %903, %v83_v14   ;;  %v267_v25 = vld [vmem:[%s1226_s4 + $0x68] sm:$0xff]  ;;  %v264_v28 = vld [vmem:[%s1226_s4 + $0x50] sm:$0xff]  ;;  %v265_v30 = vld [vmem:[%s1226_s4 + $0x58] sm:$0xff] }
   0x8   :  { %v55_v15 = vadd.f32 %v54_v9, %v1016_v12  ;;  %111 = vperm.xlu1 %904, %v81_v16  }
   0xa   :  { %921 = vrsqrt.f32 %v55_v15  ;;  %vm58_vm1 = vcmp.eq.f32.partialorder %v55_v15, inf  ;;  %vm60_vm2 = vcmp.eq.f32.partialorder %v55_v15, 0.0  ;;  %v61_v22 = vand.u32 2147483648, %v55_v15 }
   0xb   :  { %96 = vperm.xlu0 %903, %v78_v17  }
   0xc   :  { %101 = vperm.xlu1 %904, %v79_v18  }
   0xf   :  { %86 = vperm.xlu0 %903, %v76_v19  }
  0x10   :  { %91 = vperm.xlu1 %904, %v77_v20  }
  0x13   :  { %342 = vperm.xlu0 %903, %v268_v21  }
  0x14   :  { %347 = vperm.xlu1 %904, %v269_v23  }
  0x17   :  { %v922_v26 = vpop.eup %921  ;;  %332 = vperm.xlu0 %903, %v266_v24  }
  0x18   :  { %v57_v27 = vmul.f32 %v922_v26, %v55_v15  ;;  %337 = vperm.xlu1 %904, %v267_v25  }
  0x1a   :  { %v59_v29 = vsel %vm58_vm1, %v55_v15, %v57_v27 }
  0x1b   :  { %v62_v31 = vsel %vm60_vm2, %v61_v22, %v59_v29 }
  0x1c   :  { %v783_v32 = vadd.f32 -0.12, %v62_v31 }
  0x1d   :  { %15 = vsyncpa [#allocation4], 0  ;;  %322 = vperm.xlu0 %903, %v264_v28   ;;  %327 = vperm.xlu1 %904, %v265_v30   ;;  %v262_v33 = vld [vmem:[%s1226_s4 + $0x40] sm:$0xff]  ;;  %v263_v34 = vld [vmem:[%s1226_s4 + $0x48] sm:$0xff]  ;;  %vm157_vm3 = vcmask 1045504   ;;  %vm390_vm4 = vcmask 523264   ;;  %923 = vrsqrt.f32 %v1016_v12 }
  0x1e   :  { %64 = vst [vmem:[%s1222_s0 + $0xb] sm:$0x1] %v783_v32  ;;  %v65_v35 = vld [vmem:[%s1222_s0] sm:$0xff]  ;;  %v260_v36 = vld [vmem:[%s1226_s4 + $0x30] sm:$0xff]  ;;  %v261_v37 = vld [vmem:[%s1226_s4 + $0x38] sm:$0xff]  ;;  %vm45_vm5 = vcmp.eq.f32.partialorder %v1016_v12, inf }
  0x1f   :  { %v258_v40 = vld [vmem:[%s1226_s4 + $0x20] sm:$0xff]  ;;  %v906_v42 = vld [vmem:[%s1223_s1 + $0x8] sm:$0xff]   ;;  %v907_v44 = vld [vmem:[%s1223_s1 + $0x10] sm:$0xff]   ;;  %vm47_vm6 = vcmp.eq.f32.partialorder %v1016_v12, 0.0  ;;  %s949_s15 = smov [#allocation3]   ;;  %vm765_vm8 = vcmask 1040384  }
  0x20   :  { %v259_v43 = vld [vmem:[%s1226_s4 + $0x28] sm:$0xff]  ;;  %v256_v45 = vld [vmem:[%s1226_s4 + $0x10] sm:$0xff]  ;;  %v257_v46 = vld [vmem:[%s1226_s4 + $0x18] sm:$0xff] }
  0x21   :  { %312 = vperm.xlu0 %903, %v262_v33   ;;  %317 = vperm.xlu1 %904, %v263_v34   ;;  %v254_v47 = vld [vmem:[%s1226_s4] sm:$0xff]  ;;  %v908_v48 = vld [vmem:[%s1223_s1 + $0x18] sm:$0xff]   ;;  %v255_v49 = vld [vmem:[%s1226_s4 + $0x8] sm:$0xff]  ;;  %s774_s1 = sshll.u32 %s949_s15, 4  ;;  %s775_s1 = int_to_ptr.vmem [resolvable:$true] %s774_s1 }
  0x22   :  { %v544_v50 = vld [vmem:[%s1228_s6] sm:$0xff]  ;;  %v545_v51 = vld [vmem:[%s1228_s6 + $0x8] sm:$0xff]  ;;  %v546_v52 = vld [vmem:[%s1228_s6 + $0x10] sm:$0xff]  ;;  %s925_s16 = scalar_lea.vmem %s775_s1, 32  ;;  %p930_p1 = scmp.lt.s32.totalorder %s775_s1, %s775_s1 }
  0x23   :  { %v547_v53 = vld [vmem:[%s1228_s6 + $0x18] sm:$0xff]  ;;  %v689_v54 = vld [vmem:[%s1229_s7] sm:$0xff]  ;;  %v690_v55 = vld [vmem:[%s1229_s7 + $0x8] sm:$0xff]  ;;  %p926_p0 = scmp.ne.s32.totalorder %s775_s1, %s925_s16  ;;  %p931_p2 = scmp.lt.s32.totalorder %s925_s16, %s925_s16 }
  0x24   :  { %v548_v56 = vld [vmem:[%s1228_s6 + $0x20] sm:$0xff]  ;;  %v691_v57 = vld [vmem:[%s1229_s7 + $0x10] sm:$0xff]  ;;  %v549_v58 = vld [vmem:[%s1228_s6 + $0x28] sm:$0xff] }
  0x25   :  { %v66_v38 = vld [vmem:[%s1222_s0 + $0x8] sm:$0xf]  ;;  %302 = vperm.xlu0 %903, %v260_v36   ;;  %307 = vperm.xlu1 %904, %v261_v37   ;;  %v692_v59 = vld [vmem:[%s1229_s7 + $0x18] sm:$0xff]  ;;  %v550_v60 = vld [vmem:[%s1228_s6 + $0x30] sm:$0xff]  ;;  %p932_p3 = por %p931_p2, %p930_p1 }
  0x26   :  { %v67_v39 = vpack.c.bf16 %v66_v38, %v65_v35  ;;  %v693_v61 = vld [vmem:[%s1229_s7 + $0x20] sm:$0xff]  ;;  %v551_v62 = vld [vmem:[%s1228_s6 + $0x38] sm:$0xff]  ;;  %v694_v63 = vld [vmem:[%s1229_s7 + $0x28] sm:$0xff] }
  0x27   :  { %v695_v0 = vld [vmem:[%s1229_s7 + $0x30] sm:$0xff]  ;;  %v696_v1 = vld [vmem:[%s1229_s7 + $0x38] sm:$0xff]  ;;  %v909_v2 = vld [vmem:[%s1225_s3] sm:$0xff]   ;;  %p933_p4 = pnand %p932_p3, %p926_p0 }
  0x28   :  { %899 = vmatprep.subr.msk.bf16.mxu0 %vm157_vm3, %v67_v39  ;;  %v159_v41 = vsel %vm157_vm3, %v67_v39, 0  ;;  %859 = vmatprep.mubr.msk.bf16.mxu1 %vm390_vm4, %v909_v2 }
  0x29   :  { %842 = vmatpush3.bf16.msra.mxu0 %v159_v41  ;;  %292 = vperm.xlu0 %903, %v258_v40   ;;  %v910_v40 = vld [vmem:[%s1225_s3 + $0x8] sm:$0xff]   ;;  %v911_v41 = vld [vmem:[%s1225_s3 + $0x10] sm:$0xff]  }
  0x2a   :  { %297 = vperm.xlu1 %904, %v259_v43   ;;  %v913_v43 = vld [vmem:[%s1225_s3 + $0x20] sm:$0xff]  }
  0x2c   :  { %844 = vmatmul.mubr.msk.bf16.vlgmr.msra.gmra.mxu0 %vm144_vm0, %v906_v42  ;;  %v912_v42 = vld [vmem:[%s1225_s3 + $0x18] sm:$0xff]  }
  0x2d   :  { %847 = vmatprep.mubr.msk.bf16.mxu0 %vm144_vm0, %v907_v44  ;;  %282 = vperm.xlu0 %903, %v256_v45   ;;  %v914_v44 = vld [vmem:[%s1225_s3 + $0x28] sm:$0xff]   ;;  %v915_v45 = vld [vmem:[%s1225_s3 + $0x30] sm:$0xff]  }
  0x2e   :  { %287 = vperm.xlu1 %904, %v257_v46   ;;  %v916_v46 = vld [vmem:[%s1225_s3 + $0x38] sm:$0xff]  }
  0x31   :  { %272 = vperm.xlu0 %903, %v254_v47   ;;  %v917_v47 = vld [vmem:[%s1227_s5] sm:$0xff]  }
  0x32   :  { %277 = vperm.xlu1 %904, %v255_v49  }
  0x34   :  { %848 = vmatmul.mubr.msk.bf16.gmra.mxu0 %vm144_vm0, %v908_v48 }
  0x35   :  { %554 = vperm.xlu0 %903, %v544_v50   ;;  %891 = vmatprep.mubr.bf16.mxu0 %v917_v47 }
  0x36   :  { %559 = vperm.xlu1 %904, %v545_v51  }
  0x39   :  { %564 = vperm.xlu0 %903, %v546_v52  }
  0x3a   :  { %569 = vperm.xlu1 %904, %v547_v53  }
  0x3d   :  { %699 = vperm.xlu0 %903, %v689_v54  }
  0x3e   :  { %704 = vperm.xlu1 %904, %v690_v55  }
  0x41   :  { %574 = vperm.xlu0 %903, %v548_v56  }
  0x42   :  { %709 = vperm.xlu1 %904, %v691_v57  }
  0x45   :  { %579 = vperm.xlu0 %903, %v549_v58  }
  0x46   :  { %714 = vperm.xlu1 %904, %v692_v59  }
  0x49   :  { %584 = vperm.xlu0 %903, %v550_v60  }
  0x4a   :  { %719 = vperm.xlu1 %904, %v693_v61  }
  0x4d   :  { %589 = vperm.xlu0 %903, %v551_v62  }
  0x4e   :  { %724 = vperm.xlu1 %904, %v694_v63  }
  0x51   :  { %729 = vperm.xlu0 %903, %v695_v0  }
  0x52   :  { %734 = vperm.xlu1 %904, %v696_v1  }
  0x7e   :  { %v117_v5 = vpop.permute.xlu0 %116 }
  0x7f   :  { %v107_v3 = vpop.permute.xlu1 %106 }
  0x82   :  { %v122_v10 = vpop.permute.xlu0 %121 }
  0x83   :  { %v112_v8 = vpop.permute.xlu1 %111 }
  0x86   :  { %v97_v19 = vpop.permute.xlu0 %96 }
  0x87   :  { %v102_v15 = vpop.permute.xlu1 %101 }
  0x8a   :  { %v87_v33 = vpop.permute.xlu0 %86 }
  0x8b   :  { %v92_v29 = vpop.permute.xlu1 %91 }
  0x8e   :  { %v343_v54 = vpop.permute.xlu0 %342 }
  0x8f   :  { %v348_v52 = vpop.permute.xlu1 %347 }
  0x92   :  { %v333_v59 = vpop.permute.xlu0 %332 }
  0x93   :  { %v338_v57 = vpop.permute.xlu1 %337 }
  0x98   :  { %v328_v62 = vpop.permute.xlu1 %327  ;;  %v323_v0 = vpop.permute.xlu0 %322 }
  0xec   :  { %v845_v4 = vpop.f32.mrf.mxu0 }
  0xed   :  { %v204_v25 = vadd.f32 %v845_v4, %v97_v19 }
  0xee   :  { %v195_v6 = vpop.f32.mrf.mxu0 }
  0xef   :  { %v228_v34 = vmax.f32 %v204_v25, 0.0  ;;  %v196_v35 = vadd.f32 %v195_v6, %v87_v33  ;;  %v313_v6 = vpop.permute.xlu0 %312 }
  0xf0   :  { %v846_v7 = vpop.f32.mrf.mxu0 }
  0xf1   :  { %v207_v21 = vadd.f32 %v846_v7, %v102_v15  ;;  %v226_v38 = vmax.f32 %v196_v35, 0.0 }
  0xf2   :  { %v198_v9 = vpop.f32.mrf.mxu0 }
  0xf3   :  { %v229_v30 = vmax.f32 %v207_v21, 0.0  ;;  %v199_v31 = vadd.f32 %v198_v9, %v92_v29  ;;  %v303_v21 = vpop.permute.xlu0 %302 }
  0xf4   :  { %v849_v11 = vpop.f32.mrf.mxu0 }
  0xf5   :  { %v220_v14 = vadd.f32 %v849_v11, %v117_v5  ;;  %v235_v36 = vpack.c.bf16 %v229_v30, %v228_v34  ;;  %v227_v37 = vmax.f32 %v199_v31, 0.0 }
  0xf6   :  { %v211_v13 = vpop.f32.mrf.mxu0 }
  0xf7   :  { %v212_v17 = vadd.f32 %v211_v13, %v107_v3  ;;  %v232_v22 = vmax.f32 %v220_v14, 0.0  ;;  %v234_v39 = vpack.c.bf16 %v227_v37, %v226_v38  ;;  %v318_v3 = vpop.permute.xlu1 %317  ;;  %v293_v31 = vpop.permute.xlu0 %292 }
  0xf8   :  { %v850_v16 = vpop.f32.mrf.mxu0 }
  0xf9   :  { %v223_v18 = vadd.f32 %v850_v16, %v122_v10  ;;  %v230_v26 = vmax.f32 %v212_v17, 0.0 }
  0xfa   :  { %v214_v20 = vpop.f32.mrf.mxu0 }
  0xfb   :  { %v233_v23 = vmax.f32 %v223_v18, 0.0  ;;  %v215_v24 = vadd.f32 %v214_v20, %v112_v8  ;;  %v308_v16 = vpop.permute.xlu1 %307 }
  0xfd   :  { %v231_v27 = vmax.f32 %v215_v24, 0.0  ;;  %v237_v28 = vpack.c.bf16 %v233_v23, %v232_v22 }
  0xff   :  { %v236_v32 = vpack.c.bf16 %v231_v27, %v230_v26  ;;  %851 = vmatprep.subr.bf16.mxu1 %v237_v28  ;;  %v298_v27 = vpop.permute.xlu1 %297 }
 0x100   :  { %852 = vmatpush3.bf16.msra.mxu1 %v237_v28 }
 0x101   :  { %853 = vmatprep.subr.bf16.mxu1 %v236_v32 }
 0x103   :  { %v288_v37 = vpop.permute.xlu1 %287 }
 0x104   :  { %854 = vmatpush3.bf16.msra.mxu1 %v236_v32 }
 0x105   :  { %855 = vmatprep.subr.bf16.mxu1 %v235_v36 }
 0x108   :  { %856 = vmatpush3.bf16.msra.mxu1 %v235_v36 }
 0x109   :  { %857 = vmatprep.subr.bf16.mxu1 %v234_v39 }
 0x10c   :  { %858 = vmatpush3.bf16.msra.mxu1 %v234_v39 }
 0x10f   :  { %860 = vmatmul.mubr.msk.bf16.vlgmr.msra.gmra.mxu1 %vm390_vm4, %v910_v40  ;;  %v283_v40 = vpop.permute.xlu0 %282 }
 0x110   :  { %863 = vmatprep.mubr.msk.bf16.mxu1 %vm390_vm4, %v911_v41 }
 0x117   :  { %864 = vmatmul.mubr.msk.bf16.gmra.mxu1 %vm390_vm4, %v912_v42 }
 0x118   :  { %867 = vmatprep.mubr.msk.bf16.mxu1 %vm390_vm4, %v913_v43 }
 0x11f   :  { %868 = vmatmul.mubr.msk.bf16.gmra.mxu1 %vm390_vm4, %v914_v44 }
 0x120   :  { %871 = vmatprep.mubr.msk.bf16.mxu1 %vm390_vm4, %v915_v45 }
 0x127   :  { %872 = vmatmul.mubr.msk.bf16.gmra.mxu1 %vm390_vm4, %v916_v46  ;;  %v278_v46 = vpop.permute.xlu1 %277 }
 0x1cf   :  { %v1192_v48 = vpop.f32.mrf.mxu1 }
 0x1d0   :  { %v458_v44 = vadd.f32 %v1192_v48, %v283_v40  ;;  %v918_v48 = vld [vmem:[%s1227_s5 + $0x8] sm:$0xff]  }
 0x1d1   :  { %v1194_v49 = vpop.f32.mrf.mxu1 }
 0x1d3   :  { %v862_v50 = vpop.f32.mrf.mxu1 }
 0x1d4   :  { %v461_v41 = vadd.f32 %v862_v50, %v288_v37 }
 0x1d5   :  { %v1196_v51 = vpop.f32.mrf.mxu1 }
 0x1d6   :  { %v515_v47 = vmax.f32 %v461_v41, 0.0 }
 0x1d7   :  { %v865_v53 = vpop.f32.mrf.mxu1 }
 0x1d8   :  { %v474_v32 = vadd.f32 %v865_v53, %v303_v21 }
 0x1d9   :  { %v465_v55 = vpop.f32.mrf.mxu1 }
 0x1da   :  { %v518_v38 = vmax.f32 %v474_v32, 0.0  ;;  %v466_v39 = vadd.f32 %v465_v55, %v293_v31 }
 0x1db   :  { %v866_v56 = vpop.f32.mrf.mxu1 }
 0x1dc   :  { %v477_v28 = vadd.f32 %v866_v56, %v308_v16  ;;  %v516_v45 = vmax.f32 %v466_v39, 0.0  ;;  %v514_v56 = vmax.f32 %v458_v44, 0.0 }
 0x1dd   :  { %v468_v58 = vpop.f32.mrf.mxu1 }
 0x1de   :  { %v519_v34 = vmax.f32 %v477_v28, 0.0  ;;  %v469_v35 = vadd.f32 %v468_v58, %v298_v27 }
 0x1df   :  { %v869_v60 = vpop.f32.mrf.mxu1 }
 0x1e0   :  { %v490_v17 = vadd.f32 %v869_v60, %v323_v0  ;;  %v531_v42 = vpack.c.bf16 %v519_v34, %v518_v38  ;;  %v517_v43 = vmax.f32 %v469_v35, 0.0 }
 0x1e1   :  { %v481_v61 = vpop.f32.mrf.mxu1 }
 0x1e2   :  { %v522_v25 = vmax.f32 %v490_v17, 0.0  ;;  %v482_v26 = vadd.f32 %v481_v61, %v313_v6  ;;  %v530_v53 = vpack.c.bf16 %v517_v43, %v516_v45  ;;  %v560_v61 = vpop.permute.xlu1 %559  ;;  %v924_v45 = vpop.eup %923 }
 0x1e3   :  { %v870_v63 = vpop.f32.mrf.mxu1 }
 0x1e4   :  { %v493_v11 = vadd.f32 %v870_v63, %v328_v62  ;;  %v520_v33 = vmax.f32 %v482_v26, 0.0 }
 0x1e5   :  { %v484_v1 = vpop.f32.mrf.mxu1 }
 0x1e6   :  { %v523_v22 = vmax.f32 %v493_v11, 0.0  ;;  %v485_v23 = vadd.f32 %v484_v1, %v318_v3  ;;  %v570_v63 = vpop.permute.xlu1 %569 }
 0x1e7   :  { %v873_v2 = vpop.f32.mrf.mxu1 }
 0x1e8   :  { %v506_v5 = vadd.f32 %v873_v2, %v343_v54  ;;  %v533_v29 = vpack.c.bf16 %v523_v22, %v522_v25  ;;  %v521_v30 = vmax.f32 %v485_v23, 0.0  ;;  %v273_v54 = vpop.permute.xlu0 %272 }
 0x1e9   :  { %v497_v4 = vpop.f32.mrf.mxu1  ;;  %v450_v55 = vadd.f32 %v1194_v49, %v273_v54  ;;  %v920_v49 = vld [vmem:[%s1227_s5 + $0x18] sm:$0xff]  }
 0x1ea   :  { %v498_v8 = vadd.f32 %v497_v4, %v333_v59  ;;  %v526_v13 = vmax.f32 %v506_v5, 0.0  ;;  %v532_v36 = vpack.c.bf16 %v521_v30, %v520_v33  ;;  %v705_v1 = vpop.permute.xlu1 %704 }
 0x1eb   :  { %v874_v7 = vpop.f32.mrf.mxu1  ;;  %v512_v58 = vmax.f32 %v450_v55, 0.0  ;;  %v44_v55 = vmul.f32 %v924_v45, %v1016_v12 }
 0x1ec   :  { %v509_v9 = vadd.f32 %v874_v7, %v348_v52  ;;  %v524_v18 = vmax.f32 %v498_v8, 0.0  ;;  %v453_v52 = vadd.f32 %v1196_v51, %v278_v46  ;;  %v919_v51 = vld [vmem:[%s1227_s5 + $0x10] sm:$0xff]   ;;  %v555_v60 = vpop.permute.xlu0 %554 }
 0x1ed   :  { %v500_v10 = vpop.f32.mrf.mxu1 }
 0x1ee   :  { %v527_v14 = vmax.f32 %v509_v9, 0.0  ;;  %v501_v15 = vadd.f32 %v500_v10, %v338_v57  ;;  %v529_v57 = vpack.c.bf16 %v515_v47, %v514_v56  ;;  %v513_v50 = vmax.f32 %v453_v52, 0.0  ;;  %v710_v3 = vpop.permute.xlu1 %709 }
 0x1f0   :  { %v535_v19 = vpack.c.bf16 %v527_v14, %v526_v13  ;;  %v525_v20 = vmax.f32 %v501_v15, 0.0  ;;  %v528_v59 = vpack.c.bf16 %v513_v50, %v512_v58  ;;  %v565_v62 = vpop.permute.xlu0 %564  ;;  %v48_v50 = vand.u32 2147483648, %v1016_v12 }
 0x1f2   :  { %v534_v24 = vpack.c.bf16 %v525_v20, %v524_v18  ;;  %875 = vmatprep.subr.bf16.mxu0 %v535_v19  ;;  %v715_v8 = vpop.permute.xlu1 %714 }
 0x1f3   :  { %876 = vmatpush3.bf16.msra.mxu0 %v535_v19 }
 0x1f4   :  { %877 = vmatprep.subr.bf16.mxu0 %v534_v24  ;;  %v700_v0 = vpop.permute.xlu0 %699 }
 0x1f6   :  { %v720_v20 = vpop.permute.xlu1 %719 }
 0x1f7   :  { %878 = vmatpush3.bf16.msra.mxu0 %v534_v24 }
 0x1f8   :  { %879 = vmatprep.subr.bf16.mxu0 %v533_v29  ;;  %v575_v2 = vpop.permute.xlu0 %574 }
 0x1fa   :  { %v725_v37 = vpop.permute.xlu1 %724 }
 0x1fb   :  { %880 = vmatpush3.bf16.msra.mxu0 %v533_v29 }
 0x1fc   :  { %881 = vmatprep.subr.bf16.mxu0 %v532_v36  ;;  %v580_v5 = vpop.permute.xlu0 %579 }
 0x1ff   :  { %882 = vmatpush3.bf16.msra.mxu0 %v532_v36 }
 0x200   :  { %883 = vmatprep.subr.bf16.mxu0 %v531_v42  ;;  %v585_v16 = vpop.permute.xlu0 %584 }
 0x203   :  { %884 = vmatpush3.bf16.msra.mxu0 %v531_v42 }
 0x204   :  { %885 = vmatprep.subr.bf16.mxu0 %v530_v53  ;;  %v590_v31 = vpop.permute.xlu0 %589 }
 0x207   :  { %886 = vmatpush3.bf16.msra.mxu0 %v530_v53  ;;  %v735_v53 = vpop.permute.xlu1 %734 }
 0x208   :  { %887 = vmatprep.subr.bf16.mxu0 %v529_v57  ;;  %v730_v46 = vpop.permute.xlu0 %729 }
 0x20b   :  { %888 = vmatpush3.bf16.msra.mxu0 %v529_v57 }
 0x20c   :  { %889 = vmatprep.subr.bf16.mxu0 %v528_v59 }
 0x20f   :  { %890 = vmatpush3.bf16.msra.mxu0 %v528_v59  ;;  %v46_v59 = vsel %vm45_vm5, %v1016_v12, %v44_v55 }
 0x212   :  { %892 = vmatmul.mubr.bf16.vlgmr.msra.gmra.mxu0 %v918_v48 }
 0x213   :  { %895 = vmatprep.mubr.bf16.mxu0 %v919_v51  ;;  %v49_v51 = vsel %vm47_vm6, %v48_v50, %v46_v59 }
 0x214   :  { %vm50_vm7 = vcmp.le.f32.partialorder %v49_v51, 1.0 }
 0x21a   :  { %896 = vmatmul.mubr.bf16.gmra.mxu0 %v920_v49 }
 0x2d2   :  { %v893_v4 = vpop.f32.mrf.mxu0 }
 0x2d3   :  { %v659_v10 = vadd.f32 %v893_v4, %v565_v62  ;;  %v948_v62 = vmov 0.0  }
 0x2d4   :  { %v650_v6 = vpop.f32.mrf.mxu0 }
 0x2d5   :  { %v651_v7 = vadd.f32 %v650_v6, %v555_v60  ;;  %v683_v18 = vmax.f32 %v659_v10, 0.0 }
 0x2d6   :  { %v894_v9 = vpop.f32.mrf.mxu0 }
 0x2d7   :  { %v681_v13 = vmax.f32 %v651_v7, 0.0  ;;  %v662_v14 = vadd.f32 %v894_v9, %v570_v63  ;;  %v739_v27 = vmul.f32 %v710_v3, %v683_v18  ;;  %v782_v63 = vsel %vm50_vm7, 1.0, %v948_v62 }
 0x2d8   :  { %v653_v11 = vpop.f32.mrf.mxu0  ;;  %v763_v3 = vrot.slane %v782_v63, 7 }
 0x2d9   :  { %v654_v15 = vadd.f32 %v653_v11, %v560_v61  ;;  %v737_v22 = vmul.f32 %v700_v0, %v681_v13  ;;  %v684_v23 = vmax.f32 %v662_v14, 0.0  ;;  %v759_v0 = vstv %s1230_s8 }
 0x2da   :  { %v897_v17 = vpop.f32.mrf.mxu0 }
 0x2db   :  { %v682_v19 = vmax.f32 %v654_v15, 0.0  ;;  %v675_v29 = vadd.f32 %v897_v17, %v585_v16  ;;  %v740_v33 = vmul.f32 %v715_v8, %v684_v23 }
 0x2dc   :  { %v666_v21 = vpop.f32.mrf.mxu0 }
 0x2dd   :  { %v738_v24 = vmul.f32 %v705_v1, %v682_v19  ;;  %v667_v25 = vadd.f32 %v666_v21, %v575_v2  ;;  %v687_v38 = vmax.f32 %v675_v29, 0.0 }
 0x2de   :  { %v898_v26 = vpop.f32.mrf.mxu0 }
 0x2df   :  { %v745_v28 = vadd.f32 %v738_v24, %v737_v22  ;;  %v685_v30 = vmax.f32 %v667_v25, 0.0  ;;  %v678_v35 = vadd.f32 %v898_v26, %v590_v31  ;;  %v743_v47 = vmul.f32 %v730_v46, %v687_v38 }
 0x2e0   :  { %v669_v32 = vpop.f32.mrf.mxu0 }
 0x2e1   :  { %v746_v34 = vadd.f32 %v745_v28, %v739_v27  ;;  %v670_v36 = vadd.f32 %v669_v32, %v580_v5  ;;  %v741_v39 = vmul.f32 %v720_v20, %v685_v30  ;;  %v688_v43 = vmax.f32 %v678_v35, 0.0 }
 0x2e3   :  { %v747_v40 = vadd.f32 %v746_v34, %v740_v33  ;;  %v686_v41 = vmax.f32 %v670_v36, 0.0  ;;  %v744_v54 = vmul.f32 %v735_v53, %v688_v43 }
 0x2e5   :  { %v748_v42 = vadd.f32 %v747_v40, %v741_v39  ;;  %v742_v44 = vmul.f32 %v725_v37, %v686_v41 }
 0x2e7   :  { %v749_v52 = vadd.f32 %v748_v42, %v742_v44 }
 0x2e9   :  { %v750_v56 = vadd.f32 %v749_v52, %v743_v47 }
 0x2eb   :  { %v751_v57 = vadd.f32 %v750_v56, %v744_v54 }
 0x2ed   :  { %v752_v58 = vrot.slane %v751_v57, 4 }
 0x2ef   :  { %v753_v48 = vadd.f32 %v752_v58, %v751_v57 }
 0x2f1   :  { %v754_v49 = vrot.slane %v753_v48, 2 }
 0x2f3   :  { %v755_v60 = vadd.f32 %v754_v49, %v753_v48 }
 0x2f5   :  { %v756_v61 = vrot.slane %v755_v60, 1 }
 0x2f7   :  { %v757_v1 = vadd.f32 %v756_v61, %v755_v60 }
 0x2f9   :  { %v760_v2 = vadd.f32 %v759_v0, %v757_v1 }
 0x2fb   :  { %v761_v4 = vmul.f32 %v782_v63, %v760_v2 }
 0x2fd   :  { %v766_v12 = vsel %vm765_vm8, %v761_v4, %v763_v3 }
 0x2fe   :  { %767 = vst [vmem:[#allocation3] sm:$0x3] %v766_v12 }
 0x2ff   :  { %936 = shalt.err (!%p933_p4)
}
 0x300   :  { %777 = dma.vmem_to_hbm [thread:$0]  %s775_s1, 32, %s1231_s9, [#allocation4]  }
 0x301   :  { %945 = dma.done.wait [#allocation4], 32  }
 0x302   :  { %946 = vsyncadd [#allocation4], 4294967264 }
 0x303   :  { %781 = vsyncpa [#allocation4], 1 }

</bundles_post_ra>
